<compile_context>
chip_gen: v7x
topology: tpu7x:2x2x1
jax: 0.10.0
libtpu: 0.0.40
codegen_flags: <defaults>
</compile_context>

<pallas_src>
import math

import jax
import jax.numpy as jnp
from jax.experimental import pallas as pl
from jax.experimental.pallas import tpu as pltpu


# --------------------------------------------------------------------------
# Pallas kernel: single HBM -> HBM DMA copy (no VMEM round-trip, no grid).
# --------------------------------------------------------------------------
def _dma_copy_kernel(x_ref, o_ref, sem):
    cp = pltpu.make_async_copy(x_ref, o_ref, sem)
    cp.start()
    cp.wait()


def _materialized_copy(x):
    """Bit-exact copy of `x` into a fresh buffer via one HBM->HBM DMA."""
    return pl.pallas_call(
        _dma_copy_kernel,
        out_shape=jax.ShapeDtypeStruct(x.shape, x.dtype),
        in_specs=[pl.BlockSpec(memory_space=pl.ANY)],   # raw HBM ref, no auto-DMA
        out_specs=pl.BlockSpec(memory_space=pl.ANY),    # raw HBM ref, no auto-DMA
        scratch_shapes=[pltpu.SemaphoreType.DMA(())],
    )(x)


# --------------------------------------------------------------------------
# Shape plumbing (torch-style view semantics, incl. a single -1 wildcard).
# --------------------------------------------------------------------------
def _normalize_shape(shape):
    """Accept an int or an iterable of ints (torch's View wraps in (shape,))."""
    if isinstance(shape, (tuple, list)):
        return tuple(int(s) for s in shape)
    return (int(shape),)


def _resolve_shape(shape, total):
    """Resolve a single torch-style -1 wildcard, with torch-like validation."""
    shape = list(shape)
    neg = [i for i, s in enumerate(shape) if s == -1]
    if len(neg) > 1:
        raise ValueError("only one dimension can be inferred (-1)")
    if neg:
        known = math.prod(s for s in shape if s != -1)
        if known == 0 or total % known != 0:
            raise ValueError(
                f"cannot infer -1: {total} elements not divisible by {known}")
        shape[neg[0]] = total // known
    return tuple(shape)


def view_forward(x, target_shape, *, materialize=False):
    total = math.prod(x.shape)
    target_shape = _resolve_shape(target_shape, total)
    if total != math.prod(target_shape):
        raise ValueError(f"cannot view {x.shape} as {target_shape}")

    if not materialize or total == 0:
        # Default: metadata-only reshape — zero HBM bytes, exactly like
        # torch's x.view(*shape). Nothing in a kernel can beat not running it.
        return jnp.reshape(x, target_shape)

    # Explicit fresh-buffer request: one HBM->HBM DMA, then a free metadata
    # reshape of the copied buffer to the target shape.
    return jnp.reshape(_materialized_copy(x), target_shape)


class ViewPallas:
    """JAX/Pallas equivalent of the PyTorch View module."""

    def __init__(self, shape):
        self.shape = _normalize_shape(shape)

    def __call__(self, x, *, materialize=False):
        return view_forward(x, self.shape, materialize=materialize)


if __name__ == "__main__":
    key = jax.random.PRNGKey(0)
    # NCHW input: batch=2, channels=4, spatial=16x16  -> View(2048)
    x = jax.random.normal(key, (2, 4, 16, 16), dtype=jnp.float32)
    y_ref = jnp.reshape(x, (2048,))

    module = ViewPallas(2 * 4 * 16 * 16)  # equivalent of torch View(2048)

    # Default path: metadata-only view (zero HBM traffic), == torch x.view(2048).
    y = jax.block_until_ready(module(x))
    assert y.shape == (2048,), y.shape
    assert y.dtype == x.dtype
    assert bool(jnp.array_equal(y, y_ref))

    # Opt-in materialized path: exercises the Pallas HBM->HBM DMA copy kernel.
    y_mat = jax.block_until_ready(module(x, materialize=True))
    assert y_mat.shape == (2048,), y_mat.shape
    assert y_mat.dtype == x.dtype
    assert bool(jnp.array_equal(y_mat, y_ref))

    # Multi-dim / wildcard target shape (torch-style view), also materialized.
    module2 = ViewPallas((2, -1))
    y2 = jax.block_until_ready(module2(x, materialize=True))
    assert y2.shape == (2, 1024), y2.shape
    assert bool(jnp.array_equal(y2, jnp.reshape(x, (2, 1024))))

    print("KERNEL_OK")
</pallas_src>

<mosaic_0001>
module attributes {stable_mosaic.version = 11 : i64} {
  func.func @_dma_copy_kernel(%arg0: memref<2x4x16x16xf32, #tpu.memory_space<any>>, %arg1: memref<2x4x16x16xf32, #tpu.memory_space<any>>, %arg2: memref<!tpu.dma_semaphore, #tpu.memory_space<semaphore_mem>>) attributes {dimension_semantics = [], scalar_prefetch = 0 : i64, scratch_operands = 1 : i64, tpu.core_type = #tpu.core_type<tc>} {
    tpu.enqueue_dma source(%arg0 : memref<2x4x16x16xf32, #tpu.memory_space<any>>) target(%arg1 : memref<2x4x16x16xf32, #tpu.memory_space<any>>) target_semaphore(%arg2 : memref<!tpu.dma_semaphore, #tpu.memory_space<semaphore_mem>>)
    tpu.wait_dma2 semaphore(%arg2 : memref<!tpu.dma_semaphore, #tpu.memory_space<semaphore_mem>>) src(%arg0 : memref<2x4x16x16xf32, #tpu.memory_space<any>>) dst(%arg1 : memref<2x4x16x16xf32, #tpu.memory_space<any>>)
    return
  }
}

</mosaic_0001>

<bundles_post_ra>
// kernel: tpu_custom_call.1
= control target key start
LH: loop header
LB: loop body
LE: loop exit
PB: predicated region body
PF: predicated region fallthrough
CT: control target
= control target key end

     0   :  { %s36_s6 = smov [#allocation2]   ;;  %s37_s7 = smov [#allocation3]   ;;  %s55_s0 = inlined_call_operand.hbm [shape: f32[2,4,16,16], index: 0, kind: input, shape index: {}]   ;;  %s56_s1 = inlined_call_operand.hbm [shape: f32[2,4,16,16], index: 1, kind: output, shape index: {}]  }
   0x1   :  { %s38_s8 = smov 0  }
   0x2   :  { %18 = dma.general %s55_s0, 2048, %s56_s1, %s36_s6, %s37_s7, [#allocation4], %s38_s8, 0  }
   0x3   :  { %34 = dma.done.wait [#allocation2], 2048 }
   0x4   :  { %35 = vsyncadd [#allocation2], 4294965248 }
   0x5   :  { %24 = vsyncmov [#allocation2] }
   0x8   :  { %s25_s13 = vpop.sfrf %24 }
   0x9   :  { %p30_p0 = scmp.ne.s32.totalorder %s25_s13, 0 }
   0xb   :  { %29 = shalt.err (%p30_p0)  }

</bundles_post_ra>
